<compile_context>
chip_gen: v7x
topology: tpu7x:2x2x1
jax: 0.10.0
libtpu: 0.0.40
codegen_flags: <defaults>
</compile_context>

<pallas_src>
import functools
import math

import jax
import jax.numpy as jnp
from jax.experimental import pallas as pl
from jax.experimental.pallas import tpu as pltpu


def _round_up(x, m):
    return ((x + m - 1) // m) * m


def _conv1d_tile_kernel(x_ref, xh_ref, w_ref, b_ref, o_ref, *,
                        kernel_size, dilation, stride, tile_l, dot_dtype):
    """One (batch, L-tile) grid step.

    x_ref  : (stride, C_in, tile_l)    current tile, stride-phase-major
    xh_ref : (stride, C_in, halo_pad)  right halo (start of the next tile)
    w_ref  : (K, C_out, C_in)          resident weights
    b_ref  : (C_out, 1)                resident bias
    o_ref  : (C_out, tile_l)           output tile (lane-dense, 128-multiple)
    """
    c_out = w_ref.shape[1]
    acc = jnp.zeros((c_out, tile_l), dtype=jnp.float32)

    # Per-phase "current tile + right halo" slab, built once (both pieces are
    # 128-aligned in the lane dim, so the concat is cheap vreg placement).
    wide_cache = {}

    def _wide(r):
        if r not in wide_cache:
            wide_cache[r] = jnp.concatenate([x_ref[r], xh_ref[r]], axis=-1)
        return wide_cache[r]

    for k in range(kernel_size):
        off = k * dilation
        r = off % stride            # which stride-phase plane
        q = off // stride           # shift in output columns (small, static)
        if q == 0:
            x_k = x_ref[r]                       # (C_in, tile_l), no shift
        else:
            # Small static lane shift of one tile; rides under the MXU work.
            x_k = _wide(r)[:, q:q + tile_l]      # (C_in, tile_l)
        w_k = w_ref[k]                           # (C_out, C_in)
        if dot_dtype is not None:
            x_k = x_k.astype(dot_dtype)
            w_k = w_k.astype(dot_dtype)
        acc = acc + jnp.dot(w_k, x_k, preferred_element_type=jnp.float32)

    acc = acc + b_ref[...].astype(jnp.float32)   # (C_out, 1) broadcast over lanes
    o_ref[...] = acc.astype(o_ref.dtype)


def conv_norm_forward(signal, weight, bias=None, *, stride=1, padding=None,
                      dilation=1, tile_l=512, dot_dtype=None):
    """Pallas implementation of ConvNorm.forward (== torch.nn.Conv1d)."""
    b, c_in, length = signal.shape
    c_out, c_in_w, ksize = weight.shape
    assert c_in == c_in_w
    if padding is None:
        assert ksize % 2 == 1
        padding = int(dilation * (ksize - 1) / 2)
    if bias is None:
        bias = jnp.zeros((c_out,), signal.dtype)

    l_out = (length + 2 * padding - dilation * (ksize - 1) - 1) // stride + 1
    assert l_out > 0

    # ---- tile sizes (lane dims always multiples of 128) --------------------
    halo_q = (dilation * (ksize - 1)) // stride        # right halo, in output cols
    halo_pad = max(128, _round_up(halo_q, 128))        # halo block width
    tl = min(_round_up(max(tile_l, 128), 128), _round_up(l_out, 128))
    tl = _round_up(max(tl, 128), halo_pad)             # halo block index must be exact
    n_lt = (l_out + tl - 1) // tl

    # ---- padded, stride-phase-major input ----------------------------------
    # x_ph[b, r, c, q] = x_pad[b, c, q*stride + r]; every tap's window is then
    # a contiguous, block-aligned lane slab of one phase plane.
    l_q_need = n_lt * tl + halo_pad
    l_total = max(l_q_need * stride, length + 2 * padding)
    l_total = _round_up(l_total, stride)
    x_padded = jnp.pad(signal,
                       ((0, 0), (0, 0), (padding, l_total - length - padding)))
    l_q = l_total // stride
    x_ph = x_padded.reshape(b, c_in, l_q, stride).transpose(0, 3, 1, 2)

    w_t = jnp.transpose(weight, (2, 0, 1))             # (K, C_out, C_in)
    bias2d = bias.reshape(c_out, 1)

    kernel = functools.partial(
        _conv1d_tile_kernel, kernel_size=ksize, dilation=dilation,
        stride=stride, tile_l=tl, dot_dtype=dot_dtype)

    halo_blocks_per_tile = tl // halo_pad

    out_full = pl.pallas_call(
        kernel,
        out_shape=jax.ShapeDtypeStruct((b, c_out, n_lt * tl), signal.dtype),
        grid=(b, n_lt),
        in_specs=[
            # current L tile (all stride phases), block-aligned
            pl.BlockSpec((None, stride, c_in, tl),
                         lambda bi, li: (bi, 0, 0, li)),
            # right halo: first halo_pad quotient columns of the next tile
            pl.BlockSpec((None, stride, c_in, halo_pad),
                         lambda bi, li: (bi, 0, 0, (li + 1) * halo_blocks_per_tile)),
            # weights + bias: constant index map -> DMA'd once, stay resident
            pl.BlockSpec((ksize, c_out, c_in), lambda bi, li: (0, 0, 0)),
            pl.BlockSpec((c_out, 1), lambda bi, li: (0, 0)),
        ],
        out_specs=pl.BlockSpec((None, c_out, tl), lambda bi, li: (bi, 0, li)),
        compiler_params=pltpu.CompilerParams(
            dimension_semantics=("parallel", "parallel"),
            vmem_limit_bytes=32 * 1024 * 1024),
    )(x_ph, x_ph, w_t, bias2d)

    if n_lt * tl != l_out:
        out_full = out_full[:, :, :l_out]
    return out_full


def init_conv_norm_params(key, in_channels, out_channels, kernel_size,
                          w_init_gain='linear', dtype=jnp.float32):
    """Xavier-uniform weight (torch calculate_gain), torch-default bias init."""
    gain = {'linear': 1.0, 'relu': math.sqrt(2.0), 'tanh': 5.0 / 3.0}[w_init_gain]
    fan_in = in_channels * kernel_size
    fan_out = out_channels * kernel_size
    limit = gain * math.sqrt(6.0 / (fan_in + fan_out))
    kw, kb = jax.random.split(key)
    weight = jax.random.uniform(kw, (out_channels, in_channels, kernel_size),
                                dtype=dtype, minval=-limit, maxval=limit)
    b_lim = 1.0 / math.sqrt(fan_in)
    bias = jax.random.uniform(kb, (out_channels,), dtype=dtype,
                              minval=-b_lim, maxval=b_lim)
    return weight, bias


if __name__ == "__main__":
    key = jax.random.PRNGKey(0)
    k_sig, k_par = jax.random.split(key)

    batch, c_in, c_out, length = 2, 4, 6, 16
    signal = jax.random.normal(k_sig, (batch, c_in, length), dtype=jnp.float32)

    configs = [
        dict(kernel_size=3, stride=1, dilation=1, gain="linear"),
        dict(kernel_size=1, stride=1, dilation=1, gain="relu"),
        dict(kernel_size=5, stride=1, dilation=2, gain="tanh"),
        dict(kernel_size=3, stride=2, dilation=1, gain="linear"),
    ]
    for i, cfg in enumerate(configs):
        kk = jax.random.fold_in(k_par, i)
        weight, bias = init_conv_norm_params(kk, c_in, c_out, cfg["kernel_size"],
                                             w_init_gain=cfg["gain"])
        out = conv_norm_forward(signal, weight, bias, stride=cfg["stride"],
                                padding=None, dilation=cfg["dilation"])
        jax.block_until_ready(out)

        pad = (cfg["dilation"] * (cfg["kernel_size"] - 1)) // 2
        ref = jax.lax.conv_general_dilated(
            signal, weight, window_strides=(cfg["stride"],),
            padding=[(pad, pad)], rhs_dilation=(cfg["dilation"],),
            dimension_numbers=("NCH", "OIH", "NCH")) + bias[None, :, None]
        assert out.shape == ref.shape, (cfg, out.shape, ref.shape)
        max_err = float(jnp.max(jnp.abs(out - ref)))
        assert jnp.allclose(out, ref, atol=1e-5, rtol=1e-5), (cfg, max_err)

        if i == 0:
            # Optional bf16-MXU fast path (f32 accumulate) — loose smoke check.
            out_bf16 = conv_norm_forward(signal, weight, bias, stride=1,
                                         padding=None, dilation=1,
                                         dot_dtype=jnp.bfloat16)
            jax.block_until_ready(out_bf16)
            assert jnp.allclose(out_bf16, ref, atol=1e-1, rtol=1e-1)

    print("KERNEL_OK")
</pallas_src>

<mosaic_0001>
module attributes {stable_mosaic.version = 11 : i64} {
  func.func @_conv1d_tile_kernel(%arg0: i32, %arg1: i32, %arg2: memref<1x1x4x128xf32, #tpu.memory_space<vmem>>, %arg3: memref<1x1x4x128xf32, #tpu.memory_space<vmem>>, %arg4: memref<3x6x4xf32, #tpu.memory_space<vmem>>, %arg5: memref<6x1xf32, #tpu.memory_space<vmem>>, %arg6: memref<1x6x128xf32, #tpu.memory_space<vmem>>) attributes {dimension_semantics = [#tpu.dimension_semantics<parallel>, #tpu.dimension_semantics<parallel>], iteration_bounds = array<i64: 2, 1>, scalar_prefetch = 0 : i64, scratch_operands = 0 : i64, tpu.core_type = #tpu.core_type<tc>, window_params = [{transform_indices = @transform_0, window_bounds = array<i64: 1, 1, 4, 128>}, {transform_indices = @transform_1, window_bounds = array<i64: 1, 1, 4, 128>}, {pipeline_mode = #tpu.pipeline_mode<synchronous>, transform_indices = @transform_2, window_bounds = array<i64: 3, 6, 4>}, {pipeline_mode = #tpu.pipeline_mode<synchronous>, transform_indices = @transform_3, window_bounds = array<i64: 6, 1>}, {transform_indices = @transform_4, window_bounds = array<i64: 1, 6, 128>}]} {
    %cst = arith.constant 0.000000e+00 : f32
    %0 = vector.broadcast %cst : f32 to vector<6x128xf32>
    %c0 = arith.constant 0 : index
    %c0_0 = arith.constant 0 : index
    %c0_1 = arith.constant 0 : index
    %c0_2 = arith.constant 0 : index
    %1 = vector.load %arg2[%c0, %c0_0, %c0_1, %c0_2] : memref<1x1x4x128xf32, #tpu.memory_space<vmem>>, vector<1x1x4x128xf32>
    %2 = vector.shape_cast %1 : vector<1x1x4x128xf32> to vector<4x128xf32>
    %c0_3 = arith.constant 0 : index
    %c0_4 = arith.constant 0 : index
    %c0_5 = arith.constant 0 : index
    %3 = vector.load %arg4[%c0_3, %c0_4, %c0_5] : memref<3x6x4xf32, #tpu.memory_space<vmem>>, vector<1x6x4xf32>
    %4 = vector.shape_cast %3 : vector<1x6x4xf32> to vector<6x4xf32>
    %cst_6 = arith.constant dense<0.000000e+00> : vector<6x128xf32>
    %5 = tpu.matmul %4, %2, %cst_6 {dimension_numbers = #tpu.dot_dimension_numbers<[1], [0], [0], [1], [0, 0, 1, 1], [], []>} : vector<6x4xf32>, vector<4x128xf32>, vector<6x128xf32> -> vector<6x128xf32>
    %6 = arith.addf %0, %5 : vector<6x128xf32>
    %c0_7 = arith.constant 0 : index
    %c0_8 = arith.constant 0 : index
    %c0_9 = arith.constant 0 : index
    %c0_10 = arith.constant 0 : index
    %7 = vector.load %arg2[%c0_7, %c0_8, %c0_9, %c0_10] : memref<1x1x4x128xf32, #tpu.memory_space<vmem>>, vector<1x1x4x128xf32>
    %8 = vector.shape_cast %7 : vector<1x1x4x128xf32> to vector<4x128xf32>
    %c0_11 = arith.constant 0 : index
    %c0_12 = arith.constant 0 : index
    %c0_13 = arith.constant 0 : index
    %c0_14 = arith.constant 0 : index
    %9 = vector.load %arg3[%c0_11, %c0_12, %c0_13, %c0_14] : memref<1x1x4x128xf32, #tpu.memory_space<vmem>>, vector<1x1x4x128xf32>
    %10 = vector.shape_cast %9 : vector<1x1x4x128xf32> to vector<4x128xf32>
    %11 = tpu.concatenate %8, %10 in 1 : vector<4x128xf32>, vector<4x128xf32> -> vector<4x256xf32>
    %12 = vector.extract_strided_slice %11 {offsets = [0, 1], sizes = [4, 128], strides = [1, 1]} : vector<4x256xf32> to vector<4x128xf32>
    %c1 = arith.constant 1 : index
    %c0_15 = arith.constant 0 : index
    %c0_16 = arith.constant 0 : index
    %13 = vector.load %arg4[%c1, %c0_15, %c0_16] : memref<3x6x4xf32, #tpu.memory_space<vmem>>, vector<1x6x4xf32>
    %14 = vector.shape_cast %13 : vector<1x6x4xf32> to vector<6x4xf32>
    %cst_17 = arith.constant dense<0.000000e+00> : vector<6x128xf32>
    %15 = tpu.matmul %14, %12, %cst_17 {dimension_numbers = #tpu.dot_dimension_numbers<[1], [0], [0], [1], [0, 0, 1, 1], [], []>} : vector<6x4xf32>, vector<4x128xf32>, vector<6x128xf32> -> vector<6x128xf32>
    %16 = arith.addf %6, %15 : vector<6x128xf32>
    %17 = vector.extract_strided_slice %11 {offsets = [0, 2], sizes = [4, 128], strides = [1, 1]} : vector<4x256xf32> to vector<4x128xf32>
    %c2 = arith.constant 2 : index
    %c0_18 = arith.constant 0 : index
    %c0_19 = arith.constant 0 : index
    %18 = vector.load %arg4[%c2, %c0_18, %c0_19] : memref<3x6x4xf32, #tpu.memory_space<vmem>>, vector<1x6x4xf32>
    %19 = vector.shape_cast %18 : vector<1x6x4xf32> to vector<6x4xf32>
    %cst_20 = arith.constant dense<0.000000e+00> : vector<6x128xf32>
    %20 = tpu.matmul %19, %17, %cst_20 {dimension_numbers = #tpu.dot_dimension_numbers<[1], [0], [0], [1], [0, 0, 1, 1], [], []>} : vector<6x4xf32>, vector<4x128xf32>, vector<6x128xf32> -> vector<6x128xf32>
    %21 = arith.addf %16, %20 : vector<6x128xf32>
    %c0_21 = arith.constant 0 : index
    %c0_22 = arith.constant 0 : index
    %22 = vector.load %arg5[%c0_21, %c0_22] : memref<6x1xf32, #tpu.memory_space<vmem>>, vector<6x1xf32>
    %23 = vector.broadcast %22 : vector<6x1xf32> to vector<6x128xf32>
    %24 = arith.addf %21, %23 : vector<6x128xf32>
    %c0_23 = arith.constant 0 : index
    %c0_24 = arith.constant 0 : index
    %c0_25 = arith.constant 0 : index
    %25 = vector.load %arg6[%c0_23, %c0_24, %c0_25] : memref<1x6x128xf32, #tpu.memory_space<vmem>>, vector<1x6x128xf32>
    %26 = vector.shape_cast %25 : vector<1x6x128xf32> to vector<6x128xf32>
    %27 = vector.shape_cast %24 : vector<6x128xf32> to vector<1x6x128xf32>
    tpu.vector_store %arg6[%c0_23, %c0_24, %c0_25], %27 {strides = array<i32>} : memref<1x6x128xf32, #tpu.memory_space<vmem>>, vector<1x6x128xf32>,
    return
  }
  func.func @transform_0(%arg0: i32, %arg1: i32) -> (i32, i32, i32, i32) {
    %c0_i32 = arith.constant 0 : i32
    %c0_i32_0 = arith.constant 0 : i32
    %c0_i32_1 = arith.constant 0 : i32
    return %arg0, %c0_i32, %c0_i32_0, %arg1 : i32, i32, i32, i32
  }
  func.func @transform_1(%arg0: i32, %arg1: i32) -> (i32, i32, i32, i32) {
    %c1_i32 = arith.constant 1 : i32
    %0 = arith.addi %arg1, %c1_i32 : i32
    %c1_i32_0 = arith.constant 1 : i32
    %1 = arith.muli %0, %c1_i32_0 : i32
    %c0_i32 = arith.constant 0 : i32
    %c0_i32_1 = arith.constant 0 : i32
    %c0_i32_2 = arith.constant 0 : i32
    return %arg0, %c0_i32, %c0_i32_1, %1 : i32, i32, i32, i32
  }
  func.func @transform_2(%arg0: i32, %arg1: i32) -> (i32, i32, i32) {
    %c0_i32 = arith.constant 0 : i32
    %c0_i32_0 = arith.constant 0 : i32
    %c0_i32_1 = arith.constant 0 : i32
    %c0_i32_2 = arith.constant 0 : i32
    return %c0_i32, %c0_i32_0, %c0_i32_1 : i32, i32, i32
  }
  func.func @transform_3(%arg0: i32, %arg1: i32) -> (i32, i32) {
    %c0_i32 = arith.constant 0 : i32
    %c0_i32_0 = arith.constant 0 : i32
    %c0_i32_1 = arith.constant 0 : i32
    return %c0_i32, %c0_i32_0 : i32, i32
  }
  func.func @transform_4(%arg0: i32, %arg1: i32) -> (i32, i32, i32) {
    %c0_i32 = arith.constant 0 : i32
    %c0_i32_0 = arith.constant 0 : i32
    return %arg0, %c0_i32, %arg1 : i32, i32, i32
  }
}

</mosaic_0001>

<bundles_post_ra>
// kernel: tpu_custom_call.1
= control target key start
LH: loop header
LB: loop body
LE: loop exit
PB: predicated region body
PF: predicated region fallthrough
CT: control target
= control target key end

     0   :  { %s746_s15 = smov 0   ;;  %s748_s16 = smov 0   ;;  %s808_s0 = inlined_call_operand.vmem [shape: f32[2,1,4,256], index: 0, kind: input, shape index: {}]   ;;  %s809_s1 = inlined_call_operand.vmem [shape: f32[2,1,4,256], index: 1, kind: input, shape index: {}]   ;;  %s810_s2 = inlined_call_operand.vmem [shape: f32[3,6,4], index: 2, kind: input, shape index: {}]   ;;  %s811_s3 = inlined_call_operand.vmem [shape: f32[6,1], index: 3, kind: input, shape index: {}]   ;;  %s812_s4 = inlined_call_operand.vmem [shape: f32[2,6,128], index: 4, kind: output, shape index: {}]  }
   0x1   :  { %s750_s17 = smov 0  }
   0x2 LB: > { %s26_s18 = sadd.s32 1, %s710_s16  ;;  %p621_p0 = scmp.ge.s32.totalorder %s714_s17, 1  ;;  %s714_s17 = sphi %s750_s17, %s14_s17   ;;  %s710_s16 = sphi %s748_s16, %s814_s16   ;;  %s706_s15 = sphi %s746_s15, %s813_s15  }
   0x3   : > { %p28_p1 = scmp.ge.s32.totalorder %s26_s18, 2  ;;  %p200_p2 = scmp.lt.s32.totalorder %s714_s17, 3 }
   0x5   : > { %s816_s18 = smov (%p28_p1, %s26_s18), 0  ;;  %p201_p3 = pnand %p621_p0, %p200_p2 }
   0x6   : > { %p240_p4 = scmp.lt.s32.totalorder (!%p201_p3), %s706_s15, 1  ;;  %v716_v0 = vmov (!%p201_p3), 0.0   ;;  %vm717_vm0 = vmmov (!%p201_p3), 0   ;;  %vm282_vm1 = vcmask (!%p201_p3), 1043456   ;;  %v718_v1 = vmov (!%p201_p3), 0   ;;  %s719_s29 = smov (!%p201_p3), 126  }
   0x7   : > { %204 = sbr.rel (%p201_p3) target bundleno = 360 (0x168), region = 36  ;;  %647 = vmatprep.subr.mxu0 (!%p201_p3), %v716_v0  ;;  %652 = vmatprep.subr.mxu1 (!%p201_p3), %v716_v0  ;;  %vm278_vm2 = vcmask (!%p201_p3), 31744   ;;  %v266_v3 = vld [vmem:[%s810_s2] sm:$0x3f] (!%p201_p3)  ;;  %s720_s30 = smov (!%p201_p3), 127   ;;  %vm276_vm3 = vcmask (!%p201_p3), 1039360  }
   0x8   : > { %649 = vmatprep.mubr.msk.f32.mxu0 (!%p201_p3), %vm717_vm0, %v716_v0  ;;  %654 = vmatprep.mubr.msk.f32.mxu1 (!%p201_p3), %vm717_vm0, %v716_v0  ;;  %v514_v5 = vld [vmem:[%s811_s3] sm:$0x3f] (!%p201_p3)  ;;  %vm436_vm4 = vcmask (!%p201_p3), 1031168   ;;  %v627_v10 = vld [vmem:[%s810_s2 + $0x8] sm:$0x3f] (!%p201_p3) }
   0x9   : > { %691 = vset.pattern.permute.xlu0 (!%p201_p3), %v718_v1  ;;  %v632_v13 = vld [vmem:[%s810_s2 + $0x10] sm:$0x3f] (!%p201_p3) }
   0xe   : > { %s818_s15 = smov (!%p240_p4, %s706_s15), 1 }
   0xf   : > { %s766_s19 = sshll.u32 %s818_s15, 3 }
  0x10   : > { %s247_s22 = scalar_lea.vmem %s808_s0, %s766_s19  ;;  %s639_s23 = sadd.s32 4, %s766_s19 }
  0x11   : > { %v265_v2 = vld [vmem:[%s247_s22] sm:$0xf]  ;;  %s256_s26 = scalar_lea.vmem %s809_s1, %s639_s23  ;;  %s264_s13 = scalar_lea.vmem %s812_s4, %s766_s19 }
  0x12   : > { %432 = vrot.lane.b32.xlu1 %v265_v2, %s719_s29  ;;  %272 = vrot.lane.b32.xlu0 %v265_v2, %s720_s30  ;;  %v267_v4 = vld [vmem:[%s256_s26] sm:$0xf] }
  0x13   : > { %653 = vmatpush3.msk.msra.mxu1 %vm282_vm1, %v265_v2 }
  0x14   : > { %655 = vmatmul.mubr.msk.f32.vlgmr.msra.gmra.mrb[0].mxu1 %vm278_vm2, %v266_v3 }
  0x16   : > { %434 = vrot.lane.b32.xlu1 %v267_v4, %s719_s29  ;;  %274 = vrot.lane.b32.xlu0 %v267_v4, %s720_s30 }
  0x1a   : > { %517 = vperm.xlu0 %691, %v514_v5  }
  0x84   : > { %v433_v6 = vpop.permute.xlu1 %432  ;;  %v273_v7 = vpop.permute.xlu0 %272 }
  0x88   : > { %v435_v8 = vpop.permute.xlu1 %434  ;;  %v275_v9 = vpop.permute.xlu0 %274 }
  0x89   : > { %v277_v11 = vsel %vm276_vm3, %v273_v7, %v275_v9  ;;  %v437_v12 = vsel %vm436_vm4, %v433_v6, %v435_v8 }
  0x8a   : > { %648 = vmatpush3.msk.msra.mxu0 %vm282_vm1, %v277_v11 }
  0x8b   : > { %650 = vmatmul.mubr.msk.f32.vlgmr.msra.gmra.mrb[0].mxu0 %vm278_vm2, %v627_v10  ;;  %657 = vmatprep.subr.mxu0 %v716_v0 }
  0x8c   : > { %658 = vmatpush3.msk.msra.mxu0 %vm282_vm1, %v437_v12  ;;  %659 = vmatprep.mubr.msk.f32.mxu0 %vm717_vm0, %v716_v0 }
  0x8f   : > { %660 = vmatmul.mubr.msk.f32.vlgmr.msra.gmra.mrb[2].mxu0 %vm278_vm2, %v632_v13 }
  0x99   : > { %v518_v20 = vpop.permute.xlu0 %517 }
  0xe7   : > { %v426_v14 = vpop.f32.mrb[0].mxu1 }
  0xe8   : > { %v656_v15 = vpop.f32.mrb[1].mxu1 }
 0x15e   : > { %v351_v16 = vpop.f32.mrb[0].mxu0 }
 0x15f   : > { %v651_v17 = vpop.f32.mrb[1].mxu0  ;;  %v427_v18 = vadd.f32 %v426_v14, %v351_v16 }
 0x162   : > { %v509_v19 = vpop.f32.mrb[2].mxu0 }
 0x163   : > { %v513_v21 = vadd.f32 %v509_v19, %v427_v18  ;;  %v661_v22 = vpop.f32.mrb[3].mxu0 }
 0x165   : > { %v520_v23 = vadd.f32 %v518_v20, %v513_v21 }
 0x167   : > { %521 = vst [vmem:[%s264_s13] sm:$0x3f] %v520_v23 }
 0x168 PF: > { %s14_s17 = sadd.s32 1, %s714_s17   ;;  %s813_s15 = smov %s710_s16 }
 0x169   : > { %p11_p5 = scmp.ge.s32.totalorder %s14_s17, 4   ;;  %s814_s16 = smov %s816_s18 }
 0x16b   :  { %13 = sbr.rel (!%p11_p5) target bundleno = 2 (0x2), region = 71 }

</bundles_post_ra>
